<compile_context>
chip_gen: v6e
topology: v6e:2x2x1
jax: 0.10.0
libtpu: 0.0.40
codegen_flags: <defaults>
</compile_context>

<pallas_src>
import functools

import jax
import jax.numpy as jnp
from jax import lax
from jax.experimental import pallas as pl
from jax.experimental.pallas import tpu as pltpu

EPS = 1e-6
LANE = 128
_VMEM_BUDGET = 40 * 1024 * 1024   # heuristic target: safe on v7x (64 MiB / TC)
_VMEM_LIMIT = 48 * 1024 * 1024    # raised scoped-VMEM limit (defaults are 16/32 MiB)


def _round_up(x, m):
    return ((x + m - 1) // m) * m


# ---------------------------------------------------------------------------
# Kernel
# ---------------------------------------------------------------------------
def positionwise_ff_kernel(
    x_ref,       # [TM, Dp]            f32   (pipelined tile)
    w_in_ref,    # [Dp, 2*Dp + Fp]     bf16  (fused fc1 | fc2 | ff1, resident)
    b_in_ref,    # [1, 2*Dp + Fp]      f32   (resident)
    w_ff2_ref,   # [Fp, Dp]            bf16  (resident)
    b_ff2_ref,   # [1, Dp]             f32   (resident)
    gamma_ref,   # [1, Dp]             f32   (resident)
    beta_ref,    # [1, Dp]             f32   (resident)
    o_ref,       # [TM, Dp]            f32   (pipelined tile)
    *, d_real, d_pad, f_pad,
):
    x_f32 = x_ref[...].astype(jnp.float32)       # residual path stays f32
    x_bf16 = x_ref[...].astype(jnp.bfloat16)     # MXU operand

    # One fused wide matmul for the three x-LHS projections (fc1 | fc2 | ff1).
    z = jnp.dot(x_bf16, w_in_ref[...],
                preferred_element_type=jnp.float32) + b_in_ref[...]
    t = z[:, :d_pad]                      # fc1(x)   (lane-aligned static slices)
    u = z[:, d_pad:2 * d_pad]             # fc2(x)
    h = z[:, 2 * d_pad:2 * d_pad + f_pad]  # ff1(x)

    # GLU gate branch and FFN branch (elementwise math in f32; EUP sigmoid).
    g = jax.nn.sigmoid(t) * u
    h = jnp.maximum(h, 0.0)
    ff = jnp.dot(h.astype(jnp.bfloat16), w_ff2_ref[...],
                 preferred_element_type=jnp.float32) + b_ff2_ref[...]

    # Residual sum + LayerNorm over the real d_model columns.
    # Padded lanes of y are exactly 0 by construction (zero-padded x / weights /
    # biases), so sums over all lanes equal sums over the real columns.
    y = x_f32 + ff + g
    if d_real == d_pad:
        mean = jnp.mean(y, axis=-1, keepdims=True)
        c = y - mean
        var = jnp.mean(c * c, axis=-1, keepdims=True)
    else:
        inv_d = 1.0 / d_real
        lane = lax.broadcasted_iota(jnp.int32, y.shape, 1)
        mask = lane < d_real
        mean = jnp.sum(y, axis=-1, keepdims=True) * inv_d
        c = jnp.where(mask, y - mean, 0.0)
        var = jnp.sum(c * c, axis=-1, keepdims=True) * inv_d
    normed = c * lax.rsqrt(var + EPS)
    # gamma/beta are zero in padded lanes -> padded output lanes are exactly 0.
    o_ref[...] = (normed * gamma_ref[...] + beta_ref[...]).astype(o_ref.dtype)


# ---------------------------------------------------------------------------
# Wrapper
# ---------------------------------------------------------------------------
def _choose_tm(m, d_pad, f_pad, tm_target):
    """Largest TM (multiple of 8, <= target) whose working set fits the budget."""
    wide = 2 * d_pad + f_pad
    weight_bytes = 2 * 2 * (d_pad * wide + f_pad * d_pad)  # bf16, x2 buffering

    def tile_bytes(t):
        return (4 * t * d_pad * 4        # x (2 bufs) + out (2 bufs), f32
                + t * wide * 4           # z intermediate (f32)
                + t * f_pad * 2          # h cast to bf16
                + 4 * t * d_pad * 4)     # g / ff / y / normed temporaries

    tm = max(8, min(_round_up(tm_target, 8), _round_up(m, 8)))
    while tm > 8 and weight_bytes + tile_bytes(tm) > _VMEM_BUDGET:
        tm = max(8, _round_up(tm // 2, 8))
    return tm


def _pack_params(params, d_pad, f_pad):
    """Pad to lane-dense shapes, fuse the x-LHS weights, cast weights to bf16."""
    def pad2(a, r, c):
        return jnp.pad(a, ((0, r - a.shape[0]), (0, c - a.shape[1])))

    w_fc1 = pad2(params["w_fc1"], d_pad, d_pad)
    w_fc2 = pad2(params["w_fc2"], d_pad, d_pad)
    w_ff1 = pad2(params["w_ff1"], d_pad, f_pad)
    w_ff2 = pad2(params["w_ff2"], f_pad, d_pad)
    b_fc1 = pad2(params["b_fc1"], 1, d_pad)
    b_fc2 = pad2(params["b_fc2"], 1, d_pad)
    b_ff1 = pad2(params["b_ff1"], 1, f_pad)
    b_ff2 = pad2(params["b_ff2"], 1, d_pad)
    gamma = pad2(params["gamma"], 1, d_pad)
    beta = pad2(params["beta"], 1, d_pad)

    w_in = jnp.concatenate([w_fc1, w_fc2, w_ff1], axis=1).astype(jnp.bfloat16)
    b_in = jnp.concatenate([b_fc1, b_fc2, b_ff1], axis=1)
    return w_in, b_in, w_ff2.astype(jnp.bfloat16), b_ff2, gamma, beta


def positionwise_ff(x, params, *, tm=512):
    """x: [bz, len_q, d_model] float32 -> [bz, len_q, d_model] float32."""
    bz, lq, d_model = x.shape
    d_ff = params["w_ff1"].shape[1]
    d_pad = _round_up(d_model, LANE)
    f_pad = _round_up(d_ff, LANE)
    wide = 2 * d_pad + f_pad

    m = bz * lq
    tm = _choose_tm(m, d_pad, f_pad, tm)
    m_pad = _round_up(m, tm)
    n_tiles = m_pad // tm

    x2 = x.reshape(m, d_model)
    x2 = jnp.pad(x2, ((0, m_pad - m), (0, d_pad - d_model)))

    w_in, b_in, w_ff2, b_ff2, gamma, beta = _pack_params(params, d_pad, f_pad)

    flops = 2 * m_pad * d_pad * wide + 2 * m_pad * f_pad * d_pad
    bytes_accessed = (x2.size * 4 + m_pad * d_pad * 4
                      + (w_in.size + w_ff2.size) * 2
                      + (b_in.size + b_ff2.size + gamma.size + beta.size) * 4)
    cost = pl.CostEstimate(flops=int(flops),
                           transcendentals=int(m_pad * (d_pad + 1)),
                           bytes_accessed=int(bytes_accessed))

    kernel = functools.partial(positionwise_ff_kernel,
                               d_real=d_model, d_pad=d_pad, f_pad=f_pad)

    def resident(shape):  # fetched once, stays VMEM-resident across grid steps
        return pl.BlockSpec(shape, lambda i: (0, 0))

    out = pl.pallas_call(
        kernel,
        out_shape=jax.ShapeDtypeStruct((m_pad, d_pad), x.dtype),
        grid=(n_tiles,),
        in_specs=[
            pl.BlockSpec((tm, d_pad), lambda i: (i, 0)),  # x: pipelined tiles
            resident((d_pad, wide)),                      # fused fc1|fc2|ff1 (bf16)
            resident((1, wide)),
            resident((f_pad, d_pad)),                     # ff2 (bf16)
            resident((1, d_pad)),
            resident((1, d_pad)),
            resident((1, d_pad)),
        ],
        out_specs=pl.BlockSpec((tm, d_pad), lambda i: (i, 0)),
        compiler_params=pltpu.CompilerParams(
            dimension_semantics=("parallel",),            # 2-TC sharding on v7x
            vmem_limit_bytes=_VMEM_LIMIT,
        ),
        cost_estimate=cost,
    )(x2, w_in, b_in, w_ff2, b_ff2, gamma, beta)

    return out[:m, :d_model].reshape(bz, lq, d_model)


# ---------------------------------------------------------------------------
# Params + references
# ---------------------------------------------------------------------------
def init_params(key, d_model, d_ff):
    ks = jax.random.split(key, 4)
    scale_dm = 1.0 / jnp.sqrt(d_model)
    scale_ff = 1.0 / jnp.sqrt(d_ff)

    def lin(k, fan_in, fan_out, scale):
        kw, kb = jax.random.split(k)
        w = jax.random.uniform(kw, (fan_in, fan_out), jnp.float32, -scale, scale)
        b = jax.random.uniform(kb, (1, fan_out), jnp.float32, -scale, scale)
        return w, b

    w_fc1, b_fc1 = lin(ks[0], d_model, d_model, scale_dm)
    w_fc2, b_fc2 = lin(ks[1], d_model, d_model, scale_dm)
    w_ff1, b_ff1 = lin(ks[2], d_model, d_ff, scale_dm)
    w_ff2, b_ff2 = lin(ks[3], d_ff, d_model, scale_ff)
    return {
        "w_fc1": w_fc1, "b_fc1": b_fc1,
        "w_fc2": w_fc2, "b_fc2": b_fc2,
        "w_ff1": w_ff1, "b_ff1": b_ff1,
        "w_ff2": w_ff2, "b_ff2": b_ff2,
        "gamma": jnp.ones((1, d_model), jnp.float32),
        "beta": jnp.zeros((1, d_model), jnp.float32),
    }


def reference_f32(x, p):
    """Exact PyTorch (eval-mode) semantics in pure f32."""
    g = jax.nn.sigmoid(x @ p["w_fc1"] + p["b_fc1"]) * (x @ p["w_fc2"] + p["b_fc2"])
    h = jnp.maximum(x @ p["w_ff1"] + p["b_ff1"], 0.0)
    ff = h @ p["w_ff2"] + p["b_ff2"]
    y = x + ff + g
    mean = jnp.mean(y, axis=-1, keepdims=True)
    var = jnp.mean((y - mean) ** 2, axis=-1, keepdims=True)
    return (y - mean) * lax.rsqrt(var + EPS) * p["gamma"] + p["beta"]


def reference_mixed(x, p):
    """Mirrors the kernel's mixed precision: bf16 matmul operands, f32 elsewhere."""
    def mm(a, w):
        return jnp.dot(a.astype(jnp.bfloat16), w.astype(jnp.bfloat16),
                       preferred_element_type=jnp.float32)
    g = jax.nn.sigmoid(mm(x, p["w_fc1"]) + p["b_fc1"]) * (mm(x, p["w_fc2"]) + p["b_fc2"])
    h = jnp.maximum(mm(x, p["w_ff1"]) + p["b_ff1"], 0.0)
    ff = mm(h, p["w_ff2"]) + p["b_ff2"]
    y = x + ff + g
    mean = jnp.mean(y, axis=-1, keepdims=True)
    var = jnp.mean((y - mean) ** 2, axis=-1, keepdims=True)
    return (y - mean) * lax.rsqrt(var + EPS) * p["gamma"] + p["beta"]


# ---------------------------------------------------------------------------
# Demo / self-check
# ---------------------------------------------------------------------------
if __name__ == "__main__":
    def run_case(bz, lq, d_model, d_ff, tm, kx, kp):
        x = jax.random.normal(kx, (bz, lq, d_model), jnp.float32)
        params = init_params(kp, d_model, d_ff)

        out = jax.block_until_ready(positionwise_ff(x, params, tm=tm))
        assert out.shape == (bz, lq, d_model)

        # Tight check against a reference with identical mixed precision.
        ref_m = reference_mixed(x, params)
        assert jnp.allclose(out, ref_m, atol=1e-3, rtol=1e-3), \
            float(jnp.max(jnp.abs(out - ref_m)))

        # Loose semantic check against the pure-f32 PyTorch-equivalent forward
        # (difference is only bf16 rounding of the matmul operands).
        ref_f = reference_f32(x, params)
        rel = jnp.sqrt(jnp.sum((out - ref_f) ** 2)) / jnp.sqrt(jnp.sum(ref_f ** 2))
        assert float(rel) < 2e-2, float(rel)

    key = jax.random.PRNGKey(0)
    k1, k2, k3, k4 = jax.random.split(key, 4)

    # Case 1: module-native small shapes (d_model=32 exercises the lane-padding
    # path: D/F padded to 128, masked LayerNorm).
    run_case(bz=2, lq=8, d_model=32, d_ff=64, tm=512, kx=k1, kp=k2)

    # Case 2: lane-aligned shapes with a multi-step pipelined grid
    # (M=1024, TM=256 -> 4 grid steps with resident weights).
    run_case(bz=2, lq=512, d_model=128, d_ff=512, tm=256, kx=k3, kp=k4)

    print("KERNEL_OK")
</pallas_src>

<mosaic_0001>
module attributes {stable_mosaic.version = 11 : i64} {
  func.func @positionwise_ff_kernel(%arg0: i32, %arg1: memref<16x128xf32, #tpu.memory_space<vmem>>, %arg2: memref<128x384xbf16, #tpu.memory_space<vmem>>, %arg3: memref<1x384xf32, #tpu.memory_space<vmem>>, %arg4: memref<128x128xbf16, #tpu.memory_space<vmem>>, %arg5: memref<1x128xf32, #tpu.memory_space<vmem>>, %arg6: memref<1x128xf32, #tpu.memory_space<vmem>>, %arg7: memref<1x128xf32, #tpu.memory_space<vmem>>, %arg8: memref<16x128xf32, #tpu.memory_space<vmem>>) attributes {dimension_semantics = [#tpu.dimension_semantics<parallel>], iteration_bounds = array<i64: 1>, scalar_prefetch = 0 : i64, scratch_operands = 0 : i64, tpu.core_type = #tpu.core_type<tc>, window_params = [{transform_indices = @transform_0, window_bounds = array<i64: 16, 128>}, {pipeline_mode = #tpu.pipeline_mode<synchronous>, transform_indices = @transform_1, window_bounds = array<i64: 128, 384>}, {pipeline_mode = #tpu.pipeline_mode<synchronous>, transform_indices = @transform_2, window_bounds = array<i64: 1, 384>}, {pipeline_mode = #tpu.pipeline_mode<synchronous>, transform_indices = @transform_3, window_bounds = array<i64: 128, 128>}, {pipeline_mode = #tpu.pipeline_mode<synchronous>, transform_indices = @transform_4, window_bounds = array<i64: 1, 128>}, {pipeline_mode = #tpu.pipeline_mode<synchronous>, transform_indices = @transform_5, window_bounds = array<i64: 1, 128>}, {pipeline_mode = #tpu.pipeline_mode<synchronous>, transform_indices = @transform_6, window_bounds = array<i64: 1, 128>}, {transform_indices = @transform_7, window_bounds = array<i64: 16, 128>}]} {
    %c0 = arith.constant 0 : index
    %c0_0 = arith.constant 0 : index
    %0 = vector.load %arg1[%c0, %c0_0] : memref<16x128xf32, #tpu.memory_space<vmem>>, vector<16x128xf32>
    %c0_1 = arith.constant 0 : index
    %c0_2 = arith.constant 0 : index
    %1 = vector.load %arg1[%c0_1, %c0_2] : memref<16x128xf32, #tpu.memory_space<vmem>>, vector<16x128xf32>
    %2 = arith.truncf %1 : vector<16x128xf32> to vector<16x128xbf16>
    %c0_3 = arith.constant 0 : index
    %c0_4 = arith.constant 0 : index
    %3 = vector.load %arg2[%c0_3, %c0_4] : memref<128x384xbf16, #tpu.memory_space<vmem>>, vector<128x384xbf16>
    %cst = arith.constant dense<0.000000e+00> : vector<16x384xf32>
    %4 = tpu.matmul %2, %3, %cst {dimension_numbers = #tpu.dot_dimension_numbers<[1], [0], [0], [1], [0, 0, 1, 1], [], []>} : vector<16x128xbf16>, vector<128x384xbf16>, vector<16x384xf32> -> vector<16x384xf32>
    %c0_5 = arith.constant 0 : index
    %c0_6 = arith.constant 0 : index
    %5 = vector.load %arg3[%c0_5, %c0_6] : memref<1x384xf32, #tpu.memory_space<vmem>>, vector<1x384xf32>
    %6 = vector.broadcast %5 : vector<1x384xf32> to vector<16x384xf32>
    %7 = arith.addf %4, %6 : vector<16x384xf32>
    %8 = vector.extract_strided_slice %7 {offsets = [0, 0], sizes = [16, 128], strides = [1, 1]} : vector<16x384xf32> to vector<16x128xf32>
    %9 = vector.extract_strided_slice %7 {offsets = [0, 128], sizes = [16, 128], strides = [1, 1]} : vector<16x384xf32> to vector<16x128xf32>
    %10 = vector.extract_strided_slice %7 {offsets = [0, 256], sizes = [16, 128], strides = [1, 1]} : vector<16x384xf32> to vector<16x128xf32>
    %11 = arith.negf %8 : vector<16x128xf32>
    %12 = math.exp %11 : vector<16x128xf32>
    %cst_7 = arith.constant 1.000000e+00 : f32
    %13 = vector.broadcast %cst_7 : f32 to vector<16x128xf32>
    %14 = arith.addf %13, %12 : vector<16x128xf32>
    %15 = arith.divf %13, %14 : vector<16x128xf32>
    %16 = arith.mulf %15, %9 : vector<16x128xf32>
    %cst_8 = arith.constant 0.000000e+00 : f32
    %17 = vector.broadcast %cst_8 : f32 to vector<16x128xf32>
    %18 = arith.maximumf %10, %17 : vector<16x128xf32>
    %19 = arith.truncf %18 : vector<16x128xf32> to vector<16x128xbf16>
    %c0_9 = arith.constant 0 : index
    %c0_10 = arith.constant 0 : index
    %20 = vector.load %arg4[%c0_9, %c0_10] : memref<128x128xbf16, #tpu.memory_space<vmem>>, vector<128x128xbf16>
    %cst_11 = arith.constant dense<0.000000e+00> : vector<16x128xf32>
    %21 = tpu.matmul %19, %20, %cst_11 {dimension_numbers = #tpu.dot_dimension_numbers<[1], [0], [0], [1], [0, 0, 1, 1], [], []>} : vector<16x128xbf16>, vector<128x128xbf16>, vector<16x128xf32> -> vector<16x128xf32>
    %c0_12 = arith.constant 0 : index
    %c0_13 = arith.constant 0 : index
    %22 = vector.load %arg5[%c0_12, %c0_13] : memref<1x128xf32, #tpu.memory_space<vmem>>, vector<1x128xf32>
    %23 = vector.broadcast %22 : vector<1x128xf32> to vector<16x128xf32>
    %24 = arith.addf %21, %23 : vector<16x128xf32>
    %25 = arith.addf %0, %24 : vector<16x128xf32>
    %26 = arith.addf %25, %16 : vector<16x128xf32>
    %27 = tpu.iota {dimensions = array<i32: 1>} : vector<16x128xi32>
    %c32_i32 = arith.constant 32 : i32
    %28 = vector.broadcast %c32_i32 : i32 to vector<16x128xi32>
    %29 = arith.cmpi slt, %27, %28 : vector<16x128xi32>
    %cst_14 = arith.constant dense<0.000000e+00> : vector<16xf32>
    %30 = vector.multi_reduction <add>, %26, %cst_14 [1] : vector<16x128xf32> to vector<16xf32>
    %31 = vector.shape_cast %30 : vector<16xf32> to vector<16x1xf32>
    %cst_15 = arith.constant 3.125000e-02 : f32
    %32 = vector.broadcast %cst_15 : f32 to vector<16x1xf32>
    %33 = arith.mulf %31, %32 : vector<16x1xf32>
    %34 = vector.broadcast %33 : vector<16x1xf32> to vector<16x128xf32>
    %35 = arith.subf %26, %34 : vector<16x128xf32>
    %cst_16 = arith.constant 0.000000e+00 : f32
    %36 = vector.broadcast %cst_16 : f32 to vector<16x128xf32>
    %37 = arith.select %29, %35, %36 : vector<16x128xi1>, vector<16x128xf32>
    %38 = arith.mulf %37, %37 : vector<16x128xf32>
    %cst_17 = arith.constant dense<0.000000e+00> : vector<16xf32>
    %39 = vector.multi_reduction <add>, %38, %cst_17 [1] : vector<16x128xf32> to vector<16xf32>
    %40 = vector.shape_cast %39 : vector<16xf32> to vector<16x1xf32>
    %cst_18 = arith.constant 3.125000e-02 : f32
    %41 = vector.broadcast %cst_18 : f32 to vector<16x1xf32>
    %42 = arith.mulf %40, %41 : vector<16x1xf32>
    %cst_19 = arith.constant 9.99999997E-7 : f32
    %43 = vector.broadcast %cst_19 : f32 to vector<16x1xf32>
    %44 = arith.addf %42, %43 : vector<16x1xf32>
    %45 = math.rsqrt %44 : vector<16x1xf32>
    %46 = vector.broadcast %45 : vector<16x1xf32> to vector<16x128xf32>
    %47 = arith.mulf %37, %46 : vector<16x128xf32>
    %c0_20 = arith.constant 0 : index
    %c0_21 = arith.constant 0 : index
    %48 = vector.load %arg6[%c0_20, %c0_21] : memref<1x128xf32, #tpu.memory_space<vmem>>, vector<1x128xf32>
    %49 = vector.broadcast %48 : vector<1x128xf32> to vector<16x128xf32>
    %50 = arith.mulf %47, %49 : vector<16x128xf32>
    %c0_22 = arith.constant 0 : index
    %c0_23 = arith.constant 0 : index
    %51 = vector.load %arg7[%c0_22, %c0_23] : memref<1x128xf32, #tpu.memory_space<vmem>>, vector<1x128xf32>
    %52 = vector.broadcast %51 : vector<1x128xf32> to vector<16x128xf32>
    %53 = arith.addf %50, %52 : vector<16x128xf32>
    %c0_24 = arith.constant 0 : index
    %c0_25 = arith.constant 0 : index
    %54 = vector.load %arg8[%c0_24, %c0_25] : memref<16x128xf32, #tpu.memory_space<vmem>>, vector<16x128xf32>
    tpu.vector_store %arg8[%c0_24, %c0_25], %53 {strides = array<i32>} : memref<16x128xf32, #tpu.memory_space<vmem>>, vector<16x128xf32>,
    return
  }
  func.func @transform_0(%arg0: i32) -> (i32, i32) {
    %c0_i32 = arith.constant 0 : i32
    %c0_i32_0 = arith.constant 0 : i32
    return %arg0, %c0_i32 : i32, i32
  }
  func.func @transform_1(%arg0: i32) -> (i32, i32) {
    %c0_i32 = arith.constant 0 : i32
    %c0_i32_0 = arith.constant 0 : i32
    %c0_i32_1 = arith.constant 0 : i32
    return %c0_i32, %c0_i32_0 : i32, i32
  }
  func.func @transform_2(%arg0: i32) -> (i32, i32) {
    %c0_i32 = arith.constant 0 : i32
    %c0_i32_0 = arith.constant 0 : i32
    %c0_i32_1 = arith.constant 0 : i32
    return %c0_i32, %c0_i32_0 : i32, i32
  }
  func.func @transform_3(%arg0: i32) -> (i32, i32) {
    %c0_i32 = arith.constant 0 : i32
    %c0_i32_0 = arith.constant 0 : i32
    %c0_i32_1 = arith.constant 0 : i32
    return %c0_i32, %c0_i32_0 : i32, i32
  }
  func.func @transform_4(%arg0: i32) -> (i32, i32) {
    %c0_i32 = arith.constant 0 : i32
    %c0_i32_0 = arith.constant 0 : i32
    %c0_i32_1 = arith.constant 0 : i32
    return %c0_i32, %c0_i32_0 : i32, i32
  }
  func.func @transform_5(%arg0: i32) -> (i32, i32) {
    %c0_i32 = arith.constant 0 : i32
    %c0_i32_0 = arith.constant 0 : i32
    %c0_i32_1 = arith.constant 0 : i32
    return %c0_i32, %c0_i32_0 : i32, i32
  }
  func.func @transform_6(%arg0: i32) -> (i32, i32) {
    %c0_i32 = arith.constant 0 : i32
    %c0_i32_0 = arith.constant 0 : i32
    %c0_i32_1 = arith.constant 0 : i32
    return %c0_i32, %c0_i32_0 : i32, i32
  }
  func.func @transform_7(%arg0: i32) -> (i32, i32) {
    %c0_i32 = arith.constant 0 : i32
    %c0_i32_0 = arith.constant 0 : i32
    return %arg0, %c0_i32 : i32, i32
  }
}

</mosaic_0001>

<bundles_post_ra>
// kernel: tpu_custom_call.1
= control target key start
LH: loop header
LB: loop body
LE: loop exit
PB: predicated region body
PF: predicated region fallthrough
CT: control target
= control target key end

     0   :  { %12 = vsyncpa [#allocation3], 0  ;;  %s888_s0 = inlined_call_operand.hbm [shape: f32[16,128], index: 0, kind: input, shape index: {}]   ;;  %s889_s1 = inlined_call_operand.hbm [shape: bf16[128,384], index: 1, kind: input, shape index: {}]   ;;  %s890_s2 = inlined_call_operand.vmem [shape: f32[1,384], index: 2, kind: input, shape index: {}]   ;;  %s891_s3 = inlined_call_operand.hbm [shape: bf16[128,128], index: 3, kind: input, shape index: {}]   ;;  %s892_s4 = inlined_call_operand.vmem [shape: f32[1,128], index: 4, kind: input, shape index: {}]   ;;  %s893_s5 = inlined_call_operand.vmem [shape: f32[1,128], index: 5, kind: input, shape index: {}]   ;;  %s894_s6 = inlined_call_operand.vmem [shape: f32[1,128], index: 6, kind: input, shape index: {}]   ;;  %s895_s7 = inlined_call_operand.hbm [shape: f32[16,128], index: 7, kind: output, shape index: {}]  }
   0x1   :  { %13 = vsyncpa [#allocation6], 0 }
   0x2   :  { %14 = vsyncpa [#allocation4], 0  ;;  %s777_s24 = smov [#allocation5]  }
   0x3   :  { %s32_s25 = sshll.u32 %s777_s24, 4  ;;  %s33_s25 = int_to_ptr.vmem [resolvable:$true] %s32_s25 }
   0x4   :  { %s699_s26 = scalar_lea.vmem %s33_s25, 3072  ;;  %p704_p1 = scmp.lt.s32.totalorder %s33_s25, %s33_s25 }
   0x5   :  { %p700_p0 = scmp.ne.s32.totalorder %s33_s25, %s699_s26  ;;  %p705_p2 = scmp.lt.s32.totalorder %s699_s26, %s699_s26 }
   0x7   :  { %p706_p3 = por %p705_p2, %p704_p1 }
   0x9   :  { %p707_p4 = pnand %p706_p3, %p700_p0 }
   0xb   :  { %710 = shalt.err (!%p707_p4)
}
   0xc   :  { %s778_s27 = smov 192   ;;  %s779_s28 = smov 12  }
   0xd   :  { %38 = dma.hbm_to_vmem [thread:$0]  %s889_s1, 3072, %s33_s25, [#allocation6], %s778_s27, %s778_s27, %s779_s28  }
   0xe   :  { %s780_s8 = smov [#allocation2]  }
   0xf   :  { %s20_s9 = sshll.u32 %s780_s8, 4  ;;  %s21_s9 = int_to_ptr.vmem [resolvable:$true] %s20_s9 }
  0x10   :  { %s719_s10 = scalar_lea.vmem %s21_s9, 256  ;;  %p724_p6 = scmp.lt.s32.totalorder %s21_s9, %s21_s9 }
  0x11   :  { %p720_p5 = scmp.ne.s32.totalorder %s21_s9, %s719_s10  ;;  %p725_p7 = scmp.lt.s32.totalorder %s719_s10, %s719_s10 }
  0x13   :  { %p726_p8 = por %p725_p7, %p724_p6 }
  0x15   :  { %p727_p9 = pnand %p726_p8, %p720_p5 }
  0x17   :  { %730 = shalt.err (!%p727_p9)
}
  0x18   :  { %s781_s11 = smov 128   ;;  %s782_s12 = smov 8  }
  0x19   :  { %26 = dma.hbm_to_vmem [thread:$0]  %s888_s0, 256, %s21_s9, [#allocation3], %s781_s11, %s781_s11, %s782_s12  }
  0x1a   :  { %s783_s1 = smov [#allocation7]  }
  0x1b   :  { %s46_s15 = sshll.u32 %s783_s1, 4  ;;  %s47_s15 = int_to_ptr.vmem [resolvable:$true] %s46_s15 }
  0x1c   :  { %s739_s16 = scalar_lea.vmem %s47_s15, 1024  ;;  %p744_p11 = scmp.lt.s32.totalorder %s47_s15, %s47_s15 }
  0x1d   :  { %p740_p10 = scmp.ne.s32.totalorder %s47_s15, %s739_s16  ;;  %p745_p12 = scmp.lt.s32.totalorder %s739_s16, %s739_s16 }
  0x1f   :  { %p746_p13 = por %p745_p12, %p744_p11 }
  0x21   :  { %p747_p0 = pnand %p746_p13, %p740_p10 }
  0x23   :  { %750 = shalt.err (!%p747_p0)
}
  0x24   :  { %s784_s17 = smov 64   ;;  %s785_s18 = smov 4  }
  0x25   :  { %52 = dma.hbm_to_vmem [thread:$0]  %s891_s3, 1024, %s47_s15, [#allocation6], %s784_s17, %s784_s17, %s785_s18  }
  0x26   :  { %771 = dma.done.wait [#allocation3], 256  }
  0x27   :  { %772 = vsyncadd [#allocation3], 4294967040 }
  0x28   :  { %773 = dma.done.wait [#allocation6], 4096  }
  0x29   :  { %774 = vsyncadd [#allocation6], 4294963200  ;;  %v786_v0 = vmov 0.0   ;;  %vm787_vm0 = vmmov 0   ;;  %v788_v1 = vmov 0   ;;  %v851_v19 = vld [vmem:[#allocation2] sm:$0xff]  ;;  %v106_v37 = vlaneseq }
  0x2a   :  { %586 = vmatprep.subr.bf16.mxu1 %v786_v0  ;;  %602 = vmatprep.mubr.msk.bf16.mxu1 %vm787_vm0, %v786_v0  ;;  %v639_v2 = vld [vmem:[#allocation5 + $0xb0] ss:$12 sps:$4 sm:$0xff]   ;;  %v640_v3 = vld [vmem:[#allocation5 + $0x98] ss:$12 sps:$4 sm:$0xff]   ;;  %v641_v4 = vld [vmem:[#allocation5 + $0x80] ss:$12 sps:$4 sm:$0xff]  }
  0x2b   :  { %281 = vmatprep.mubr.bf16.mxu0 %v788_v1  ;;  %587 = vmatpush3.bf16.msra.mxu1 %v639_v2  ;;  %v642_v5 = vld [vmem:[#allocation5 + $0x68] ss:$12 sps:$4 sm:$0xff]   ;;  %v647_v6 = vld [vmem:[#allocation5 + $0xac] ss:$12 sps:$4 sm:$0xff]   ;;  %v652_v9 = vld [vmem:[#allocation5 + $0x90] ss:$12 sps:$4 sm:$0xff]  }
  0x2c   :  { %588 = vmatprep.subr.bf16.mxu1 %v786_v0  ;;  %v649_v7 = vld [vmem:[#allocation5 + $0xa8] ss:$12 sps:$4 sm:$0xff]   ;;  %249 = vmatprep.subr.bf16.mxu0 %v647_v6  ;;  %v643_v11 = vld [vmem:[#allocation5 + $0x50] ss:$12 sps:$4 sm:$0xff]   ;;  %v655_v12 = vld [vmem:[#allocation5 + $0x78] ss:$12 sps:$4 sm:$0xff]  }
  0x2d   :  { %v650_v8 = vld [vmem:[#allocation5 + $0x94] ss:$12 sps:$4 sm:$0xff]   ;;  %250 = vmatpush1.bf16.msra.mxu0 %v649_v7  ;;  %v653_v10 = vld [vmem:[#allocation5 + $0x7c] ss:$12 sps:$4 sm:$0xff]   ;;  %v656_v13 = vld [vmem:[#allocation5 + $0x64] ss:$12 sps:$4 sm:$0xff]  }
  0x2e   :  { %251 = vmatprep.subr.bf16.mxu0 %v650_v8  ;;  %v644_v14 = vld [vmem:[#allocation5 + $0x38] ss:$12 sps:$4 sm:$0xff]   ;;  %v658_v15 = vld [vmem:[#allocation5 + $0x60] ss:$12 sps:$4 sm:$0xff]   ;;  %v646_v18 = vld [vmem:[#allocation5 + $0x8] ss:$12 sps:$4 sm:$0xff]  }
  0x2f   :  { %589 = vmatpush3.bf16.msra.mxu1 %v640_v3  ;;  %v659_v16 = vld [vmem:[#allocation5 + $0x4c] ss:$12 sps:$4 sm:$0xff]   ;;  %v661_v20 = vld [vmem:[#allocation5 + $0x48] ss:$12 sps:$4 sm:$0xff]   ;;  %v664_v23 = vld [vmem:[#allocation5 + $0x30] ss:$12 sps:$4 sm:$0xff]  }
  0x30   :  { %590 = vmatprep.subr.bf16.mxu1 %v786_v0  ;;  %v645_v17 = vld [vmem:[#allocation5 + $0x20] ss:$12 sps:$4 sm:$0xff]   ;;  %v853_v22 = vld [vmem:[#allocation2 + $0x8] sm:$0xff]  ;;  %v668_v27 = vld [vmem:[#allocation5 + $0x4] ss:$12 sps:$4 sm:$0xff]   ;;  %v107_v38 = vshrl.u32 %v106_v37, 7 }
  0x31   :  { %252 = vmatpush1.bf16.msra.mxu0 %v652_v9  ;;  %v662_v21 = vld [vmem:[#allocation5 + $0x34] ss:$12 sps:$4 sm:$0xff]   ;;  %v71_v24 = vpack.c.bf16 %v853_v22, %v851_v19  ;;  %v665_v25 = vld [vmem:[#allocation5 + $0x1c] ss:$12 sps:$4 sm:$0xff]   ;;  %v667_v26 = vld [vmem:[#allocation5 + $0x18] ss:$12 sps:$4 sm:$0xff]  }
  0x32   :  { %253 = vmatprep.subr.bf16.mxu0 %v653_v10  ;;  %v670_v28 = vld [vmem:[#allocation5] ss:$12 sps:$4 sm:$0xff]   ;;  %v671_v29 = vld [vmem:[#allocation7 + $0x38] sm:$0xff]   ;;  %v672_v30 = vld [vmem:[#allocation7 + $0x30] sm:$0xff]   ;;  %v116_v39 = vsub.s32 2, %v107_v38  ;;  %v108_v51 = vsub.s32 0, %v107_v38 }
  0x33   :  { %591 = vmatpush3.bf16.msra.mxu1 %v641_v4  ;;  %v673_v31 = vld [vmem:[#allocation7 + $0x28] sm:$0xff]   ;;  %v674_v32 = vld [vmem:[#allocation7 + $0x20] sm:$0xff]   ;;  %v675_v33 = vld [vmem:[#allocation7 + $0x18] sm:$0xff]   ;;  %s789_s25 = smov [#allocation8]  }
  0x34   :  { %592 = vmatprep.subr.bf16.mxu1 %v786_v0  ;;  %v676_v34 = vld [vmem:[#allocation7 + $0x10] sm:$0xff]   ;;  %v677_v35 = vld [vmem:[#allocation7 + $0x8] sm:$0xff]   ;;  %v678_v36 = vld [vmem:[#allocation7] sm:$0xff]   ;;  %s518_s26 = sshll.u32 %s789_s25, 4  ;;  %s519_s26 = int_to_ptr.vmem [resolvable:$true] %s518_s26 }
  0x35   :  { %254 = vmatpush1.bf16.msra.mxu0 %v655_v12  ;;  %v104_v40 = vld [vmem:[%s890_s2] sm:$0x7]  ;;  %s751_s27 = scalar_lea.vmem %s519_s26, 256  ;;  %p756_p2 = scmp.lt.s32.totalorder %s519_s26, %s519_s26 }
  0x36   :  { %255 = vmatprep.subr.bf16.mxu0 %v656_v13  ;;  %v117_v41 = vrot.slane %v104_v40, %v116_v39  ;;  %v109_v53 = vrot.slane %v104_v40, %v108_v51  ;;  %v557_v3 = vld [vmem:[%s892_s4] ss:$0 sm:$0xff]  ;;  %p752_p1 = scmp.ne.s32.totalorder %s519_s26, %s751_s27  ;;  %p757_p3 = scmp.lt.s32.totalorder %s751_s27, %s751_s27 }
  0x37   :  { %593 = vmatpush3.bf16.msra.mxu1 %v642_v5 }
  0x38   :  { %594 = vmatprep.subr.bf16.mxu1 %v786_v0  ;;  %p758_p4 = por %p757_p3, %p756_p2 }
  0x39   :  { %256 = vmatpush1.bf16.msra.mxu0 %v658_v15 }
  0x3a   :  { %257 = vmatprep.subr.bf16.mxu0 %v659_v16  ;;  %p759_p5 = pnand %p758_p4, %p752_p1 }
  0x3b   :  { %595 = vmatpush3.bf16.msra.mxu1 %v643_v11 }
  0x3c   :  { %596 = vmatprep.subr.bf16.mxu1 %v786_v0 }
  0x3d   :  { %258 = vmatpush1.bf16.msra.mxu0 %v661_v20 }
  0x3e   :  { %259 = vmatprep.subr.bf16.mxu0 %v662_v21  ;;  %v467_v21 = vand.u32 127, %v106_v37 }
  0x3f   :  { %597 = vmatpush3.bf16.msra.mxu1 %v644_v14 }
  0x40   :  { %598 = vmatprep.subr.bf16.mxu1 %v786_v0  ;;  %vm468_vm1 = vcmp.lt.s32.totalorder %v467_v21, 32 }
  0x41   :  { %260 = vmatpush1.bf16.msra.mxu0 %v664_v23 }
  0x42   :  { %261 = vmatprep.subr.bf16.mxu0 %v665_v25 }
  0x43   :  { %599 = vmatpush3.bf16.msra.mxu1 %v645_v17 }
  0x44   :  { %600 = vmatprep.subr.bf16.mxu1 %v786_v0 }
  0x45   :  { %262 = vmatpush1.bf16.msra.mxu0 %v667_v26 }
  0x46   :  { %263 = vmatprep.subr.bf16.mxu0 %v668_v27 }
  0x47   :  { %601 = vmatpush3.bf16.msra.mxu1 %v646_v18 }
  0x49   :  { %264 = vmatpush1.bf16.msra.mxu0 %v670_v28 }
  0x4a   :  { %603 = vmatmul.mubr.bf16.vlgmr.msra.gmra.mxu1 %v71_v24  ;;  %606 = vmatprep.subr.bf16.mxu0 %v786_v0 }
  0x4c   :  { %282 = vmatmul.mubr.bf16.vlgmr.msra.gmra.mxu0 %v71_v24 }
  0x4d   :  { %607 = vmatpush3.bf16.msra.mxu0 %v671_v29  ;;  %622 = vmatprep.mubr.msk.bf16.mxu0 %vm787_vm0, %v786_v0 }
  0x4e   :  { %608 = vmatprep.subr.bf16.mxu0 %v786_v0 }
  0x51   :  { %609 = vmatpush3.bf16.msra.mxu0 %v672_v30 }
  0x52   :  { %610 = vmatprep.subr.bf16.mxu0 %v786_v0 }
  0x55   :  { %611 = vmatpush3.bf16.msra.mxu0 %v673_v31 }
  0x56   :  { %612 = vmatprep.subr.bf16.mxu0 %v786_v0 }
  0x59   :  { %613 = vmatpush3.bf16.msra.mxu0 %v674_v32 }
  0x5a   :  { %614 = vmatprep.subr.bf16.mxu0 %v786_v0 }
  0x5d   :  { %615 = vmatpush3.bf16.msra.mxu0 %v675_v33 }
  0x5e   :  { %616 = vmatprep.subr.bf16.mxu0 %v786_v0 }
  0x61   :  { %617 = vmatpush3.bf16.msra.mxu0 %v676_v34 }
  0x62   :  { %618 = vmatprep.subr.bf16.mxu0 %v786_v0 }
  0x65   :  { %619 = vmatpush3.bf16.msra.mxu0 %v677_v35 }
  0x66   :  { %620 = vmatprep.subr.bf16.mxu0 %v786_v0  ;;  %v112_v0 = vsub.s32 1, %v107_v38  ;;  %v566_v38 = vld [vmem:[%s893_s5] ss:$0 sm:$0xff] }
  0x68   :  { %v113_v1 = vrot.slane %v104_v40, %v112_v0  ;;  %v567_v40 = vld [vmem:[%s894_s6] ss:$0 sm:$0xff] }
  0x69   :  { %621 = vmatpush3.bf16.msra.mxu0 %v678_v36 }
 0x10a   :  { %v326_v42 = vpop.f32.mrf.mxu1 }
 0x10b   :  { %v327_v44 = vadd.f32 %v326_v42, %v117_v41 }
 0x10c   :  { %v604_v43 = vpop.f32.mrf.mxu1  ;;  %v283_v52 = vpop.f32.mrf.mxu0 }
 0x10d   :  { %v347_v48 = vmax.f32 %v327_v44, 0.0  ;;  %v284_v55 = vadd.f32 %v283_v52, %v109_v53 }
 0x10e   :  { %v329_v45 = vpop.f32.mrf.mxu1  ;;  %v285_v54 = vpop.f32.mrf.mxu0 }
 0x10f   :  { %v330_v46 = vadd.f32 %v329_v45, %v117_v41  ;;  %v555_v57 = vmul.f32 -1.442695, %v284_v55  ;;  %v286_v4 = vadd.f32 %v285_v54, %v113_v1 }
 0x110   :  { %v605_v47 = vpop.f32.mrf.mxu1  ;;  %v287_v56 = vpop.f32.mrf.mxu0 }
 0x111   :  { %v348_v49 = vmax.f32 %v330_v46, 0.0  ;;  %v288_v58 = vadd.f32 %v287_v56, %v109_v53  ;;  %679 = vpow2.f32 %v555_v57 }
 0x112   :  { %v289_v2 = vpop.f32.mrf.mxu0 }
 0x113   :  { %v349_v50 = vpack.c.bf16 %v348_v49, %v347_v48  ;;  %v556_v59 = vmul.f32 -1.442695, %v288_v58  ;;  %v290_v10 = vadd.f32 %v289_v2, %v113_v1 }
 0x115   :  { %623 = vmatmul.mubr.bf16.vlgmr.msra.gmra.mxu0 %v349_v50  ;;  %681 = vpow2.f32 %v556_v59 }
 0x11e   :  { %v680_v60 = vpop.eup %679 }
 0x11f   :  { %v339_v61 = vadd.f32 1.0, %v680_v60 }
 0x121   :  { %683 = vrcp.f32 %v339_v61 }
 0x122   :  { %v682_v62 = vpop.eup %681 }
 0x123   :  { %v340_v63 = vadd.f32 1.0, %v682_v62 }
 0x125   :  { %685 = vrcp.f32 %v340_v63 }
 0x12e   :  { %v684_v5 = vpop.eup %683 }
 0x12f   :  { %v345_v9 = vmul.f32 %v684_v5, %v286_v4 }
 0x132   :  { %v686_v12 = vpop.eup %685 }
 0x133   :  { %v346_v17 = vmul.f32 %v686_v12, %v290_v10 }
 0x1d5   :  { %v455_v6 = vpop.f32.mrf.mxu0 }
 0x1d6   :  { %v456_v7 = vadd.f32 %v557_v3, %v455_v6 }
 0x1d7   :  { %v624_v8 = vpop.f32.mrf.mxu0 }
 0x1d8   :  { %v462_v11 = vadd.f32 %v456_v7, %v851_v19 }
 0x1d9   :  { %v458_v13 = vpop.f32.mrf.mxu0 }
 0x1da   :  { %v459_v14 = vadd.f32 %v557_v3, %v458_v13  ;;  %v464_v15 = vadd.f32 %v462_v11, %v345_v9 }
 0x1db   :  { %v625_v16 = vpop.f32.mrf.mxu0 }
 0x1dc   :  { %v463_v18 = vadd.f32 %v459_v14, %v853_v22  ;;  %469 = vadd.xlane.f32.xlu0 %v464_v15 }
 0x1de   :  { %v465_v20 = vadd.f32 %v463_v18, %v346_v17 }
 0x1e0   :  { %471 = vadd.xlane.f32.xlu0 %v465_v20 }
 0x265   :  { %v470_v23 = vpop.xlane.xlu0 %469 }
 0x266   :  { %v473_v24 = vmul.f32 0.03125, %v470_v23 }
 0x268   :  { %v475_v25 = vsub.f32 %v464_v15, %v473_v24 }
 0x269   :  { %v472_v26 = vpop.xlane.xlu0 %471 }
 0x26a   :  { %v474_v27 = vmul.f32 0.03125, %v472_v26  ;;  %v477_v28 = vsel %vm468_vm1, %v475_v25, 0.0 }
 0x26b   :  { %v479_v19 = vmul.f32 %v477_v28, %v477_v28 }
 0x26c   :  { %v476_v29 = vsub.f32 %v465_v20, %v474_v27 }
 0x26d   :  { %481 = vadd.xlane.f32.xlu1 %v479_v19 }
 0x26e   :  { %v478_v30 = vsel %vm468_vm1, %v476_v29, 0.0 }
 0x26f   :  { %v480_v31 = vmul.f32 %v478_v30, %v478_v30 }
 0x271   :  { %483 = vadd.xlane.f32.xlu1 %v480_v31 }
 0x2f6   :  { %v482_v32 = vpop.xlane.xlu1 %481 }
 0x2f7   :  { %v485_v33 = vmul.f32 0.03125, %v482_v32 }
 0x2f9   :  { %v487_v22 = vadd.f32 1e-06, %v485_v33 }
 0x2fa   :  { %v484_v34 = vpop.xlane.xlu1 %483 }
 0x2fb   :  { %687 = vrsqrt.f32 %v487_v22  ;;  %v486_v35 = vmul.f32 0.03125, %v484_v34 }
 0x2fd   :  { %v488_v36 = vadd.f32 1e-06, %v486_v35 }
 0x2ff   :  { %689 = vrsqrt.f32 %v488_v36 }
 0x308   :  { %v688_v37 = vpop.eup %687 }
 0x309   :  { %v491_v39 = vmul.f32 %v688_v37, %v477_v28 }
 0x30b   :  { %v500_v41 = vmul.f32 %v566_v38, %v491_v39 }
 0x30c   :  { %v690_v42 = vpop.eup %689 }
 0x30d   :  { %v492_v43 = vmul.f32 %v690_v42, %v478_v30  ;;  %v509_v44 = vadd.f32 %v567_v40, %v500_v41 }
 0x30f   :  { %v501_v45 = vmul.f32 %v566_v38, %v492_v43  ;;  %511 = vst [vmem:[#allocation8] sm:$0xff] %v509_v44 }
 0x311   :  { %v510_v46 = vadd.f32 %v567_v40, %v501_v45 }
 0x313   :  { %512 = vst [vmem:[#allocation8 + $0x8] sm:$0xff] %v510_v46 }
 0x314   :  { %762 = shalt.err (!%p759_p5)
}
 0x315   :  { %524 = dma.vmem_to_hbm [thread:$0]  %s519_s26, 256, %s895_s7, [#allocation4], %s781_s11, %s781_s11, %s782_s12  }
 0x316   :  { %775 = dma.done.wait [#allocation4], 256  }
 0x317   :  { %776 = vsyncadd [#allocation4], 4294967040 }
 0x318   :  { %528 = vsyncpa [#allocation3], 1 }
 0x319   :  { %529 = vsyncpa [#allocation6], 1 }
 0x31a   :  { %530 = vsyncpa [#allocation4], 1 }

</bundles_post_ra>
